<compile_context>
chip_gen: v6e
topology: v6e:2x2x1
jax: 0.10.0
libtpu: 0.0.40
codegen_flags: <defaults>
</compile_context>

<pallas_src>
import functools

import jax
import jax.numpy as jnp
import numpy as np
from jax.experimental import pallas as pl
from jax.experimental.pallas import tpu as pltpu

EPS = 1e-12  # torch.nn.functional.normalize default eps


def _round_up(x, m):
    return (x + m - 1) // m * m


def _row_tiling(rows, max_tile=1024):
    """Sublane-aligned row tile, capped at max_tile, aiming for >=2 tiles (dual-TC)."""
    tile = min(max_tile, max(8, _round_up(-(-rows // 2), 8)))
    padded = _round_up(rows, tile)
    return tile, padded


def _const_spec(shape):
    nd = len(shape)
    return pl.BlockSpec(shape, lambda *_: (0,) * nd)


def _l2n(x):
    # x * rsqrt(max(sumsq, eps^2)) == x / max(||x||, eps); rsqrt runs on the EUP slot.
    ss = jnp.sum(x * x, axis=-1, keepdims=True)
    return x * jax.lax.rsqrt(jnp.maximum(ss, EPS * EPS))


# ----------------------------------------------------------------------------
# Kernel 1: DETR heads on the LAST decoder layer only.
#   pred_logits = class_embed(hs[-1]);  pred_boxes = bbox_embed(hs[-1]).sigmoid()
# class_embed and bbox layer-1 share the LHS push of x (one fused matmul); the two
# outputs are separate lane-dense slabs (Cpad lanes, 128 lanes).
# ----------------------------------------------------------------------------
def _detr_head_kernel(x_ref, wA_ref, bA_ref, w2_ref, b2_ref, w3_ref, b3_ref,
                      cls_ref, box_ref):
    cpad = cls_ref.shape[-1]
    x = x_ref[...]                                                     # (tile, D)
    y = jnp.dot(x, wA_ref[...], preferred_element_type=jnp.float32) + bA_ref[...]
    cls_ref[...] = y[:, :cpad]                 # padded class cols are exactly 0
    h = jnp.maximum(y[:, cpad:], 0.0)          # bbox MLP layer 1 (128-aligned slice)
    h = jnp.maximum(jnp.dot(h, w2_ref[...],
                            preferred_element_type=jnp.float32) + b2_ref[...], 0.0)
    box_ref[...] = jax.nn.sigmoid(
        jnp.dot(h, w3_ref[...], preferred_element_type=jnp.float32) + b3_ref[...])


def detr_heads_last(hs_last, p):
    B, N, D = hs_last.shape
    C = p["class_w"].shape[1]
    Cpad = _round_up(C, 128)
    BOXW = 128

    rows = B * N
    tile, padded = _row_tiling(rows)
    x = hs_last.reshape(rows, D)
    if padded != rows:
        x = jnp.pad(x, ((0, padded - rows), (0, 0)))

    # [class_embed (lane-padded to Cpad) | bbox layer-1] fused weight / bias.
    wA = jnp.concatenate(
        [jnp.pad(p["class_w"], ((0, 0), (0, Cpad - C))), p["bbox_w1"]], axis=1)
    bA = jnp.concatenate(
        [jnp.pad(p["class_b"], ((0, 0), (0, Cpad - C))), p["bbox_b1"]], axis=1)
    w3 = jnp.pad(p["bbox_w3"], ((0, 0), (0, BOXW - p["bbox_w3"].shape[1])))
    b3 = jnp.pad(p["bbox_b3"], ((0, 0), (0, BOXW - p["bbox_b3"].shape[1])))

    cls_slab, box_slab = pl.pallas_call(
        _detr_head_kernel,
        grid=(padded // tile,),
        in_specs=[
            pl.BlockSpec((tile, D), lambda i: (i, 0)),
            _const_spec(wA.shape), _const_spec(bA.shape),
            _const_spec(p["bbox_w2"].shape), _const_spec(p["bbox_b2"].shape),
            _const_spec(w3.shape), _const_spec(b3.shape),
        ],
        out_specs=(pl.BlockSpec((tile, Cpad), lambda i: (i, 0)),
                   pl.BlockSpec((tile, BOXW), lambda i: (i, 0))),
        out_shape=(jax.ShapeDtypeStruct((padded, Cpad), jnp.float32),
                   jax.ShapeDtypeStruct((padded, BOXW), jnp.float32)),
        compiler_params=pltpu.CompilerParams(dimension_semantics=("parallel",)),
    )(x, wA, bA, p["bbox_w2"], p["bbox_b2"], w3, b3)

    cls = cls_slab[:rows, :C].reshape(B, N, C)
    box = box_slab[:rows, :4].reshape(B, N, 4)
    return cls, box


# ----------------------------------------------------------------------------
# Kernel 2: HOTR HOI head. One (batch, layer-chunk) per grid step.
#   inst_repr         = normalize(hs[-1])          (fused in-VMEM, zero-row padded)
#   H/O pointer reprs = normalize(MLP3)            (layer-1 fused with action_embed)
#   hidx/oidx         = rep @ inst^T / tau         (NT dot_general, no transpose)
#   action            = action_embed(interaction_hs)
# Three lane-dense output slabs; interaction_hs stays in (L,B,Q,D) layout.
# ----------------------------------------------------------------------------
def _hoi_head_kernel(inv_tau, ihs_ref, hs_ref,
                     w1_ref, b1_ref,
                     hw2_ref, hb2_ref, hw3_ref, hb3_ref,
                     ow2_ref, ob2_ref, ow3_ref, ob3_ref,
                     hidx_ref, oidx_ref, act_ref):
    ls, qp, d = ihs_ref.shape
    lsq = ls * qp
    x = ihs_ref[...].reshape(lsq, d)         # (L_chunk*Q, D) — in-VMEM merge

    inst = _l2n(hs_ref[...])                 # (Npad, D); padded zero rows stay 0

    # Fused layer 1: [H-ptr L1 | O-ptr L1 | action_embed], one LHS push of x.
    y1 = jnp.dot(x, w1_ref[...], preferred_element_type=jnp.float32) + b1_ref[...]
    act = y1[:, 2 * d:]                      # action logits: linear, no ReLU
    h = jnp.maximum(y1[:, :d], 0.0)
    o = jnp.maximum(y1[:, d:2 * d], 0.0)

    h = jnp.maximum(jnp.dot(h, hw2_ref[...],
                            preferred_element_type=jnp.float32) + hb2_ref[...], 0.0)
    o = jnp.maximum(jnp.dot(o, ow2_ref[...],
                            preferred_element_type=jnp.float32) + ob2_ref[...], 0.0)
    h = jnp.dot(h, hw3_ref[...], preferred_element_type=jnp.float32) + hb3_ref[...]
    o = jnp.dot(o, ow3_ref[...], preferred_element_type=jnp.float32) + ob3_ref[...]

    rep = jnp.concatenate([_l2n(h), _l2n(o)], axis=0)        # (2*lsq, D)
    # rep @ inst^T without an explicit XLU transpose of inst.
    logits = jax.lax.dot_general(
        rep, inst, (((1,), (1,)), ((), ())),
        preferred_element_type=jnp.float32) * inv_tau        # (2*lsq, Npad)

    npad = hidx_ref.shape[-1]
    apad = act_ref.shape[-1]
    hidx_ref[...] = logits[:lsq].reshape(ls, qp, npad)
    oidx_ref[...] = logits[lsq:].reshape(ls, qp, npad)
    act_ref[...] = act.reshape(ls, qp, apad)


def hoi_heads(interaction_hs, hs_last, p, tau):
    L, B, Q, D = interaction_hs.shape
    _, N, _ = hs_last.shape
    A1 = p["action_w"].shape[1]

    Qp = _round_up(Q, 8)
    Npad = _round_up(N, 128)
    Apad = _round_up(A1, 128)

    ihs = interaction_hs
    if Qp != Q:
        ihs = jnp.pad(ihs, ((0, 0), (0, 0), (0, Qp - Q), (0, 0)))
    hs_pad = hs_last
    if Npad != N:
        # Zero rows BEFORE normalization -> padded logit columns are exactly 0.
        hs_pad = jnp.pad(hs_pad, ((0, 0), (0, Npad - N), (0, 0)))

    # Fused layer-1 weights: [H_Pointer L1 | O_Pointer L1 | action_embed (lane-padded)].
    w1 = jnp.concatenate([p["h_w1"], p["o_w1"],
                          jnp.pad(p["action_w"], ((0, 0), (0, Apad - A1)))], axis=1)
    b1 = jnp.concatenate([p["h_b1"], p["o_b1"],
                          jnp.pad(p["action_b"], ((0, 0), (0, Apad - A1)))], axis=1)

    # When B == 1, split the decoder-layer stack over a second "parallel" axis so
    # both v7x TensorCores get work (rows are fully independent).
    S = 2 if (B == 1 and L >= 2 and L % 2 == 0) else 1
    LS = L // S

    kernel = functools.partial(_hoi_head_kernel, float(1.0 / tau))
    hidx, oidx, act = pl.pallas_call(
        kernel,
        grid=(B, S),
        in_specs=[
            pl.BlockSpec((LS, None, Qp, D), lambda b, s: (s, b, 0, 0)),
            pl.BlockSpec((None, Npad, D), lambda b, s: (b, 0, 0)),
            _const_spec(w1.shape), _const_spec(b1.shape),
            _const_spec(p["h_w2"].shape), _const_spec(p["h_b2"].shape),
            _const_spec(p["h_w3"].shape), _const_spec(p["h_b3"].shape),
            _const_spec(p["o_w2"].shape), _const_spec(p["o_b2"].shape),
            _const_spec(p["o_w3"].shape), _const_spec(p["o_b3"].shape),
        ],
        out_specs=(pl.BlockSpec((LS, None, Qp, Npad), lambda b, s: (s, b, 0, 0)),
                   pl.BlockSpec((LS, None, Qp, Npad), lambda b, s: (s, b, 0, 0)),
                   pl.BlockSpec((LS, None, Qp, Apad), lambda b, s: (s, b, 0, 0))),
        out_shape=(jax.ShapeDtypeStruct((L, B, Qp, Npad), jnp.float32),
                   jax.ShapeDtypeStruct((L, B, Qp, Npad), jnp.float32),
                   jax.ShapeDtypeStruct((L, B, Qp, Apad), jnp.float32)),
        compiler_params=pltpu.CompilerParams(
            dimension_semantics=("parallel", "parallel")),
    )(ihs, hs_pad, w1, b1,
      p["h_w2"], p["h_b2"], p["h_w3"], p["h_b3"],
      p["o_w2"], p["o_b2"], p["o_w3"], p["o_b3"])

    return hidx[:, :, :Q, :N], oidx[:, :, :Q, :N], act[:, :, :Q, :A1]


# ----------------------------------------------------------------------------
# HOTR.forward given decoder outputs
# ----------------------------------------------------------------------------
def hotr_forward(hs, interaction_hs, params, tau, hoi_aux_loss=True):
    """hs: [L, B, N_det, D] DETR decoder stack; interaction_hs: [L, B, Q_hoi, D]."""
    # TODO(synk): detr.backbone (ResNet NCHW convs), detr.input_proj and the DETR /
    # interaction transformer stacks are external submodules of HOTR; their decoder
    # outputs (hs, interaction_hs) are taken as inputs here.
    hs_last = hs[-1]  # class/box/inst_repr only ever consume the last decoder layer

    outputs_class_last, outputs_coord_last = detr_heads_last(hs_last, params)
    outputs_hidx, outputs_oidx, outputs_action = hoi_heads(
        interaction_hs, hs_last, params, tau)

    out = {
        "pred_logits": outputs_class_last,
        "pred_boxes": outputs_coord_last,
        "pred_hidx": outputs_hidx[-1],
        "pred_oidx": outputs_oidx[-1],
        "pred_actions": outputs_action[-1],
        "hoi_recognition_time": 0.0,   # host wall-clock timing, not kernel work
    }
    if hoi_aux_loss:
        L = outputs_action.shape[0]
        out["hoi_aux_outputs"] = [
            {"pred_logits": outputs_class_last,
             "pred_boxes": outputs_coord_last,
             "pred_hidx": outputs_hidx[i],
             "pred_oidx": outputs_oidx[i],
             "pred_actions": outputs_action[i]}
            for i in range(L - 1)
        ]
    return out


# ----------------------------------------------------------------------------
# Pure-JAX reference for correctness checking
# ----------------------------------------------------------------------------
def _ref_normalize(x):
    nrm = jnp.sqrt(jnp.sum(x * x, axis=-1, keepdims=True))
    return x / jnp.maximum(nrm, EPS)


def _ref_mlp3(x, w1, b1, w2, b2, w3, b3):
    h = jax.nn.relu(x @ w1 + b1)
    h = jax.nn.relu(h @ w2 + b2)
    return h @ w3 + b3


def ref_forward(hs, ihs, p, tau):
    cls = hs @ p["class_w"] + p["class_b"]
    box = jax.nn.sigmoid(
        _ref_mlp3(hs, p["bbox_w1"], p["bbox_b1"], p["bbox_w2"], p["bbox_b2"],
                  p["bbox_w3"], p["bbox_b3"]))
    inst = _ref_normalize(hs[-1])
    h_rep = _ref_normalize(
        _ref_mlp3(ihs, p["h_w1"], p["h_b1"], p["h_w2"], p["h_b2"], p["h_w3"], p["h_b3"]))
    o_rep = _ref_normalize(
        _ref_mlp3(ihs, p["o_w1"], p["o_b1"], p["o_w2"], p["o_b2"], p["o_w3"], p["o_b3"]))
    hidx = jnp.einsum("lbqd,bnd->lbqn", h_rep, inst) / tau
    oidx = jnp.einsum("lbqd,bnd->lbqn", o_rep, inst) / tau
    act = ihs @ p["action_w"] + p["action_b"]
    return cls, box, hidx, oidx, act


def make_params(key, D, num_classes, num_actions):
    ks = jax.random.split(key, 32)
    i = iter(range(32))

    def w(shape, scale=0.1):
        return scale * jax.random.normal(ks[next(i)], shape, dtype=jnp.float32)

    C = num_classes + 1
    A1 = num_actions + 1
    return {
        # detr.class_embed / detr.bbox_embed (MLP(D, D, 4, 3))
        "class_w": w((D, C)), "class_b": w((1, C)),
        "bbox_w1": w((D, D)), "bbox_b1": w((1, D)),
        "bbox_w2": w((D, D)), "bbox_b2": w((1, D)),
        "bbox_w3": w((D, 4)), "bbox_b3": w((1, 4)),
        # H_Pointer_embed / O_Pointer_embed (MLP(D, D, D, 3))
        "h_w1": w((D, D)), "h_b1": w((1, D)),
        "h_w2": w((D, D)), "h_b2": w((1, D)),
        "h_w3": w((D, D)), "h_b3": w((1, D)),
        "o_w1": w((D, D)), "o_b1": w((1, D)),
        "o_w2": w((D, D)), "o_b2": w((1, D)),
        "o_w3": w((D, D)), "o_b3": w((1, D)),
        # action_embed
        "action_w": w((D, A1)), "action_b": w((1, A1)),
    }


if __name__ == "__main__":
    L, B, N_DET, Q_HOI, D = 2, 2, 16, 8, 32
    NUM_CLASSES, NUM_ACTIONS, TAU = 6, 4, 0.05

    key = jax.random.PRNGKey(0)
    k_hs, k_ihs, k_par = jax.random.split(key, 3)
    # Synthetic decoder outputs standing in for detr.transformer / interaction_transformer.
    hs = jax.random.normal(k_hs, (L, B, N_DET, D), dtype=jnp.float32)
    interaction_hs = jax.random.normal(k_ihs, (L, B, Q_HOI, D), dtype=jnp.float32)
    params = make_params(k_par, D, NUM_CLASSES, NUM_ACTIONS)

    out = hotr_forward(hs, interaction_hs, params, TAU, hoi_aux_loss=True)
    out = jax.tree_util.tree_map(
        lambda x: jax.block_until_ready(x) if isinstance(x, jax.Array) else x, out)

    # Cross-check against pure-JAX reference.
    cls_r, box_r, hidx_r, oidx_r, act_r = ref_forward(hs, interaction_hs, params, TAU)
    np.testing.assert_allclose(out["pred_logits"], cls_r[-1], rtol=1e-5, atol=1e-5)
    np.testing.assert_allclose(out["pred_boxes"], box_r[-1], rtol=1e-5, atol=1e-5)
    np.testing.assert_allclose(out["pred_hidx"], hidx_r[-1], rtol=1e-4, atol=1e-4)
    np.testing.assert_allclose(out["pred_oidx"], oidx_r[-1], rtol=1e-4, atol=1e-4)
    np.testing.assert_allclose(out["pred_actions"], act_r[-1], rtol=1e-5, atol=1e-5)
    for i, aux in enumerate(out["hoi_aux_outputs"]):
        np.testing.assert_allclose(aux["pred_hidx"], hidx_r[i], rtol=1e-4, atol=1e-4)
        np.testing.assert_allclose(aux["pred_oidx"], oidx_r[i], rtol=1e-4, atol=1e-4)
        np.testing.assert_allclose(aux["pred_actions"], act_r[i], rtol=1e-5, atol=1e-5)

    print("KERNEL_OK")
</pallas_src>

<mosaic_0001>
module attributes {stable_mosaic.version = 11 : i64} {
  func.func @_detr_head_kernel(%arg0: i32, %arg1: memref<16x32xf32, #tpu.memory_space<vmem>>, %arg2: memref<32x160xf32, #tpu.memory_space<vmem>>, %arg3: memref<1x160xf32, #tpu.memory_space<vmem>>, %arg4: memref<32x32xf32, #tpu.memory_space<vmem>>, %arg5: memref<1x32xf32, #tpu.memory_space<vmem>>, %arg6: memref<32x128xf32, #tpu.memory_space<vmem>>, %arg7: memref<1x128xf32, #tpu.memory_space<vmem>>, %arg8: memref<16x128xf32, #tpu.memory_space<vmem>>, %arg9: memref<16x128xf32, #tpu.memory_space<vmem>>) attributes {dimension_semantics = [#tpu.dimension_semantics<parallel>], iteration_bounds = array<i64: 2>, scalar_prefetch = 0 : i64, scratch_operands = 0 : i64, tpu.core_type = #tpu.core_type<tc>, window_params = [{transform_indices = @transform_0, window_bounds = array<i64: 16, 32>}, {pipeline_mode = #tpu.pipeline_mode<synchronous>, transform_indices = @transform_1, window_bounds = array<i64: 32, 160>}, {pipeline_mode = #tpu.pipeline_mode<synchronous>, transform_indices = @transform_2, window_bounds = array<i64: 1, 160>}, {pipeline_mode = #tpu.pipeline_mode<synchronous>, transform_indices = @transform_3, window_bounds = array<i64: 32, 32>}, {pipeline_mode = #tpu.pipeline_mode<synchronous>, transform_indices = @transform_4, window_bounds = array<i64: 1, 32>}, {pipeline_mode = #tpu.pipeline_mode<synchronous>, transform_indices = @transform_5, window_bounds = array<i64: 32, 128>}, {pipeline_mode = #tpu.pipeline_mode<synchronous>, transform_indices = @transform_6, window_bounds = array<i64: 1, 128>}, {transform_indices = @transform_7, window_bounds = array<i64: 16, 128>}, {transform_indices = @transform_8, window_bounds = array<i64: 16, 128>}]} {
    %c0 = arith.constant 0 : index
    %c0_0 = arith.constant 0 : index
    %0 = vector.load %arg1[%c0, %c0_0] : memref<16x32xf32, #tpu.memory_space<vmem>>, vector<16x32xf32>
    %c0_1 = arith.constant 0 : index
    %c0_2 = arith.constant 0 : index
    %1 = vector.load %arg2[%c0_1, %c0_2] : memref<32x160xf32, #tpu.memory_space<vmem>>, vector<32x160xf32>
    %cst = arith.constant dense<0.000000e+00> : vector<16x160xf32>
    %2 = tpu.matmul %0, %1, %cst {dimension_numbers = #tpu.dot_dimension_numbers<[1], [0], [0], [1], [0, 0, 1, 1], [], []>} : vector<16x32xf32>, vector<32x160xf32>, vector<16x160xf32> -> vector<16x160xf32>
    %c0_3 = arith.constant 0 : index
    %c0_4 = arith.constant 0 : index
    %3 = vector.load %arg3[%c0_3, %c0_4] : memref<1x160xf32, #tpu.memory_space<vmem>>, vector<1x160xf32>
    %4 = vector.broadcast %3 : vector<1x160xf32> to vector<16x160xf32>
    %5 = arith.addf %2, %4 : vector<16x160xf32>
    %6 = vector.extract_strided_slice %5 {offsets = [0, 0], sizes = [16, 128], strides = [1, 1]} : vector<16x160xf32> to vector<16x128xf32>
    %c0_5 = arith.constant 0 : index
    %c0_6 = arith.constant 0 : index
    %7 = vector.load %arg8[%c0_5, %c0_6] : memref<16x128xf32, #tpu.memory_space<vmem>>, vector<16x128xf32>
    tpu.vector_store %arg8[%c0_5, %c0_6], %6 {strides = array<i32>} : memref<16x128xf32, #tpu.memory_space<vmem>>, vector<16x128xf32>,
    %8 = vector.extract_strided_slice %5 {offsets = [0, 128], sizes = [16, 32], strides = [1, 1]} : vector<16x160xf32> to vector<16x32xf32>
    %cst_7 = arith.constant 0.000000e+00 : f32
    %9 = vector.broadcast %cst_7 : f32 to vector<16x32xf32>
    %10 = arith.maximumf %8, %9 : vector<16x32xf32>
    %c0_8 = arith.constant 0 : index
    %c0_9 = arith.constant 0 : index
    %11 = vector.load %arg4[%c0_8, %c0_9] : memref<32x32xf32, #tpu.memory_space<vmem>>, vector<32x32xf32>
    %cst_10 = arith.constant dense<0.000000e+00> : vector<16x32xf32>
    %12 = tpu.matmul %10, %11, %cst_10 {dimension_numbers = #tpu.dot_dimension_numbers<[1], [0], [0], [1], [0, 0, 1, 1], [], []>} : vector<16x32xf32>, vector<32x32xf32>, vector<16x32xf32> -> vector<16x32xf32>
    %c0_11 = arith.constant 0 : index
    %c0_12 = arith.constant 0 : index
    %13 = vector.load %arg5[%c0_11, %c0_12] : memref<1x32xf32, #tpu.memory_space<vmem>>, vector<1x32xf32>
    %14 = vector.broadcast %13 : vector<1x32xf32> to vector<16x32xf32>
    %15 = arith.addf %12, %14 : vector<16x32xf32>
    %cst_13 = arith.constant 0.000000e+00 : f32
    %16 = vector.broadcast %cst_13 : f32 to vector<16x32xf32>
    %17 = arith.maximumf %15, %16 : vector<16x32xf32>
    %c0_14 = arith.constant 0 : index
    %c0_15 = arith.constant 0 : index
    %18 = vector.load %arg6[%c0_14, %c0_15] : memref<32x128xf32, #tpu.memory_space<vmem>>, vector<32x128xf32>
    %cst_16 = arith.constant dense<0.000000e+00> : vector<16x128xf32>
    %19 = tpu.matmul %17, %18, %cst_16 {dimension_numbers = #tpu.dot_dimension_numbers<[1], [0], [0], [1], [0, 0, 1, 1], [], []>} : vector<16x32xf32>, vector<32x128xf32>, vector<16x128xf32> -> vector<16x128xf32>
    %c0_17 = arith.constant 0 : index
    %c0_18 = arith.constant 0 : index
    %20 = vector.load %arg7[%c0_17, %c0_18] : memref<1x128xf32, #tpu.memory_space<vmem>>, vector<1x128xf32>
    %21 = vector.broadcast %20 : vector<1x128xf32> to vector<16x128xf32>
    %22 = arith.addf %19, %21 : vector<16x128xf32>
    %23 = arith.negf %22 : vector<16x128xf32>
    %24 = math.exp %23 : vector<16x128xf32>
    %cst_19 = arith.constant 1.000000e+00 : f32
    %25 = vector.broadcast %cst_19 : f32 to vector<16x128xf32>
    %26 = arith.addf %25, %24 : vector<16x128xf32>
    %27 = arith.divf %25, %26 : vector<16x128xf32>
    %c0_20 = arith.constant 0 : index
    %c0_21 = arith.constant 0 : index
    %28 = vector.load %arg9[%c0_20, %c0_21] : memref<16x128xf32, #tpu.memory_space<vmem>>, vector<16x128xf32>
    tpu.vector_store %arg9[%c0_20, %c0_21], %27 {strides = array<i32>} : memref<16x128xf32, #tpu.memory_space<vmem>>, vector<16x128xf32>,
    return
  }
  func.func @transform_0(%arg0: i32) -> (i32, i32) {
    %c0_i32 = arith.constant 0 : i32
    %c0_i32_0 = arith.constant 0 : i32
    return %arg0, %c0_i32 : i32, i32
  }
  func.func @transform_1(%arg0: i32) -> (i32, i32) {
    %c0_i32 = arith.constant 0 : i32
    %c0_i32_0 = arith.constant 0 : i32
    %c0_i32_1 = arith.constant 0 : i32
    return %c0_i32, %c0_i32_0 : i32, i32
  }
  func.func @transform_2(%arg0: i32) -> (i32, i32) {
    %c0_i32 = arith.constant 0 : i32
    %c0_i32_0 = arith.constant 0 : i32
    %c0_i32_1 = arith.constant 0 : i32
    return %c0_i32, %c0_i32_0 : i32, i32
  }
  func.func @transform_3(%arg0: i32) -> (i32, i32) {
    %c0_i32 = arith.constant 0 : i32
    %c0_i32_0 = arith.constant 0 : i32
    %c0_i32_1 = arith.constant 0 : i32
    return %c0_i32, %c0_i32_0 : i32, i32
  }
  func.func @transform_4(%arg0: i32) -> (i32, i32) {
    %c0_i32 = arith.constant 0 : i32
    %c0_i32_0 = arith.constant 0 : i32
    %c0_i32_1 = arith.constant 0 : i32
    return %c0_i32, %c0_i32_0 : i32, i32
  }
  func.func @transform_5(%arg0: i32) -> (i32, i32) {
    %c0_i32 = arith.constant 0 : i32
    %c0_i32_0 = arith.constant 0 : i32
    %c0_i32_1 = arith.constant 0 : i32
    return %c0_i32, %c0_i32_0 : i32, i32
  }
  func.func @transform_6(%arg0: i32) -> (i32, i32) {
    %c0_i32 = arith.constant 0 : i32
    %c0_i32_0 = arith.constant 0 : i32
    %c0_i32_1 = arith.constant 0 : i32
    return %c0_i32, %c0_i32_0 : i32, i32
  }
  func.func @transform_7(%arg0: i32) -> (i32, i32) {
    %c0_i32 = arith.constant 0 : i32
    %c0_i32_0 = arith.constant 0 : i32
    return %arg0, %c0_i32 : i32, i32
  }
  func.func @transform_8(%arg0: i32) -> (i32, i32) {
    %c0_i32 = arith.constant 0 : i32
    %c0_i32_0 = arith.constant 0 : i32
    return %arg0, %c0_i32 : i32, i32
  }
}

</mosaic_0001>

<bundles_post_ra>
// kernel: tpu_custom_call.1
= control target key start
LH: loop header
LB: loop body
LE: loop exit
PB: predicated region body
PF: predicated region fallthrough
CT: control target
= control target key end

     0   :  { %s1569_s0 = inlined_call_operand.hbm [shape: f32[32,32], index: 0, kind: input, shape index: {}]   ;;  %s1570_s1 = inlined_call_operand.hbm [shape: f32[32,160], index: 1, kind: input, shape index: {}]   ;;  %s1571_s2 = inlined_call_operand.vmem [shape: f32[1,160], index: 2, kind: input, shape index: {}]   ;;  %s1572_s3 = inlined_call_operand.hbm [shape: f32[32,32], index: 3, kind: input, shape index: {}]   ;;  %s1573_s4 = inlined_call_operand.vmem [shape: f32[1,32], index: 4, kind: input, shape index: {}]   ;;  %s1574_s5 = inlined_call_operand.hbm [shape: f32[32,128], index: 5, kind: input, shape index: {}]   ;;  %s1575_s6 = inlined_call_operand.vmem [shape: f32[1,128], index: 6, kind: input, shape index: {}]   ;;  %s1576_s7 = inlined_call_operand.hbm [shape: f32[32,128], index: 7, kind: output, shape index: {0}]   ;;  %s1577_s8 = inlined_call_operand.hbm [shape: f32[32,128], index: 8, kind: output, shape index: {1}]  }
   0x1   :  { %1584 = sst [smem:[#allocation18_spill]] %s1570_s1 }
   0x2   :  { %1585 = sst [smem:[#allocation19_spill]] %s1572_s3 }
   0x3   :  { %14 = vsyncpa [#allocation3], 0 }
   0x4   :  { %16 = vsyncpa [#allocation3 + $0x1], 0 }
   0x5   :  { %17 = vsyncpa [#allocation6], 0 }
   0x6   :  { %18 = vsyncpa [#allocation9], 0 }
   0x7   :  { %19 = vsyncpa [#allocation4], 0 }
   0x8   :  { %21 = vsyncpa [#allocation4 + $0x1], 0 }
   0x9   :  { %22 = vsyncpa [#allocation12], 0 }
   0xa   :  { %24 = vsyncpa [#allocation12 + $0x1], 0  ;;  %s1297_s27 = smov 0   ;;  %s1299_s28 = smov 0  }
   0xb   :  { %s1301_s29 = smov 0   ;;  %s1303_s30 = smov 0  }
   0xc LB: > { %s1318_s9 = sadd.s32 4294967295, %s1237_s30   ;;  %s861_s10 = sadd.s32 4294967294, %s1237_s30   ;;  %s1237_s30 = sphi %s1303_s30, %s1609_s30   ;;  %s1233_s29 = sphi %s1301_s29, %s1608_s29   ;;  %s1229_s28 = sphi %s1299_s28, %s1607_s28   ;;  %s1225_s27 = sphi %s1297_s27, %s1606_s27  }
   0xd   : > { %p50_p0 = scmp.ne.s32.totalorder %s1229_s28, %s1225_s27  ;;  %p1578_p1 = scmp.eq.s32.totalorder %s1318_s9, 0 }
   0xe   : > { %p206_p3 = scmp.eq.s32.totalorder %s861_s10, 1  ;;  %p862_p5 = scmp.ge.s32.totalorder %s1237_s30, 1 }
   0xf   : > { %p1327_p4 = por %p1578_p1, %p50_p0  ;;  %p239_p7 = scmp.lt.s32.totalorder %s1237_s30, 3 }
  0x10   : > { %p1332_p6 = por %p206_p3, %p50_p0  ;;  %s1239_s14 = smov [#allocation5]  }
  0x11   : > { %s1586_s11 = scalar_select %p1327_p4, 1, 0 }
  0x12   : > { %s1587_s12 = scalar_select %p1332_p6, 1, 0 }
  0x13   : > { %p1337_p8 = pnand %p862_p5, %p239_p7  ;;  %s251_s15 = sshll.u32 %s1239_s14, 4  ;;  %s252_s15 = int_to_ptr.vmem [resolvable:$true] %s251_s15 }
  0x14   : > { %s1240_s17 = smov [#allocation7]   ;;  %s1040_s19 = scalar_lea.vmem %s252_s15, 1024 }
  0x15   : > { %s1588_s13 = scalar_select %p1337_p8, 1, 0 }
  0x16   : > { %p950_p9 = pneg %p1337_p8  ;;  %s267_s18 = sshll.u32 %s1240_s17, 4  ;;  %s268_s18 = int_to_ptr.vmem [resolvable:$true] %s267_s18 }
  0x17   : > { %p1041_p13 = scmp.ne.s32.totalorder %s252_s15, %s1040_s19  ;;  %p1048_p5 = scmp.lt.s32.totalorder %s252_s15, %s252_s15 }
  0x18   : > { %p1346_p11 = pnand %p950_p9, %p1578_p1  ;;  %p1049_p7 = scmp.lt.s32.totalorder %s1040_s19, %s1040_s19 }
  0x1a   : > { %p1031_p12 = pneg %p1346_p11  ;;  %p1050_p10 = por %p1049_p7, %p1048_p5 }
  0x1c   : > { %p1043_p0 = pnand %p1041_p13, %p1031_p12 }
  0x1e   : > { %p1044_p3 = pneg %p1043_p0 }
  0x20   : > { %p1051_p9 = pnand %p1050_p10, %p1044_p3 }
  0x22   : > { %1054 = shalt.err (!%p1051_p9)
}
  0x23   : > { %s1241_s20 = smov 256   ;;  %s1242_s21 = smov 16  }
  0x24   : > { %s1590_s1 = sld [smem:[#allocation18_spill]]  ;;  %s1066_s24 = scalar_lea.vmem %s268_s18, 512 }
  0x25   : > { %p1067_p1 = scmp.ne.s32.totalorder %s268_s18, %s1066_s24  ;;  %p1074_p2 = scmp.lt.s32.totalorder %s268_s18, %s268_s18 }
  0x26   : > { %p1075_p6 = scmp.lt.s32.totalorder %s1066_s24, %s1066_s24 }
  0x27   : > { %p1069_p13 = pnand %p1067_p1, %p1031_p12 }
  0x28   : > { %p1076_p5 = por %p1075_p6, %p1074_p2 }
  0x29   : > { %p1070_p0 = pneg %p1069_p13 }
  0x2a   : > { %953 = dma.hbm_to_vmem [thread:$0]  (!%p1346_p11), %s1590_s1, 1024, %s252_s15, [#allocation6], %s1241_s20, %s1241_s20, %s1242_s21  }
  0x2b   : > { %p1077_p10 = pnand %p1076_p5, %p1070_p0 }
  0x2d   : > { %1080 = shalt.err (!%p1077_p10)
}
  0x2e   : > { %s1579_s25 = smov 128   ;;  %s1580_s26 = smov 8  }
  0x2f   : > { %s1591_s3 = sld [smem:[#allocation19_spill]]  ;;  %s1245_s15 = smov [#allocation8]  }
  0x30   : > { %s283_s17 = sshll.u32 %s1245_s15, 4  ;;  %s1372_s19 = sadd.s32 1, %s1237_s30   ;;  %s284_s17 = int_to_ptr.vmem [resolvable:$true] %s283_s17 }
  0x31   : > { %s1092_s20 = scalar_lea.vmem %s284_s17, 512  ;;  %p1100_p3 = scmp.lt.s32.totalorder %s284_s17, %s284_s17 }
  0x32   : > { %p1093_p1 = scmp.ne.s32.totalorder %s284_s17, %s1092_s20  ;;  %p1101_p7 = scmp.lt.s32.totalorder %s1092_s20, %s1092_s20 }
  0x34   : > { %p1095_p2 = pnand %p1093_p1, %p1031_p12  ;;  %p1102_p9 = por %p1101_p7, %p1100_p3 }
  0x35   : > { %956 = dma.hbm_to_vmem [thread:$0]  (!%p1346_p11), %s1591_s3, 512, %s268_s18, [#allocation6], %s1579_s25, %s1579_s25, %s1580_s26  }
  0x36   : > { %p1096_p6 = pneg %p1095_p2 }
  0x38   : > { %p1103_p13 = pnand %p1102_p9, %p1096_p6 }
  0x3a   : > { %1106 = shalt.err (!%p1103_p13)
}
  0x3b   : > { %959 = dma.hbm_to_vmem [thread:$0]  (!%p1346_p11), %s1574_s5, 512, %s284_s17, [#allocation9], %s1579_s25, %s1579_s25, %s1580_s26  }
  0x3c   : > { %s34_s22 = ssub.s32 %s1237_s30, %s1372_s19  ;;  %s37_s16 = sadd.s32 1, %s1233_s29 }
  0x3d   : > { %p35_p12 = scmp.eq.s32.totalorder %s34_s22, 0  ;;  %p44_p0 = scmp.ne.s32.totalorder %s1233_s29, %s1229_s28 }
  0x3e   : > { %p45_p5 = scmp.eq.s32.totalorder %s1237_s30, 0  ;;  %p974_p10 = scmp.lt.s32.totalorder %s1237_s30, 2 }
  0x3f   : > { %s1393_s23 = scalar_select %p35_p12, %s1233_s29, %s37_s16  }
  0x40   : > { %p46_p1 = por %p45_p5, %p44_p0  ;;  %p1592_p2 = scmp.eq.s32.totalorder %s1318_s9, 1 }
  0x41   : > { %s300_s10 = sand.u32 1, %s1233_s29   ;;  %s895_s14 = sshll.u32 %s1237_s30, 8 }
  0x42   : > { %p1397_p6 = por %p1592_p2, %p44_p0  ;;  %s867_s15 = sshll.u32 %s300_s10, 4 }
  0x43   : > { %s1406_s17 = scalar_lea.hbm %s1569_s0, %s895_s14  ;;  %s304_s21 = scalar_lea.vmem [#allocation2], %s867_s15 }
  0x44   : > { %s1593_s24 = scalar_select %p1397_p6, 1, 0 }
  0x45   : > { %s311_s22 = sshll.u32 %s304_s21, 4  ;;  %p1408_p11 = pnand %p974_p10, %p46_p1  ;;  %s1412_s22 = int_to_ptr.vmem [resolvable:$true] %s311_s22 }
  0x46   : > { %s1414_s25 = scalar_lea.sflag [#allocation3], %s300_s10  ;;  %s1107_s26 = scalar_lea.hbm %s1406_s17, 256 }
  0x47   : > { %p1108_p3 = scmp.ne.s32.totalorder %s1406_s17, %s1107_s26  ;;  %p1109_p7 = pneg %p1408_p11 }
  0x48   : > { %s1112_s15 = scalar_lea.hbm %s1569_s0, 512  ;;  %p1113_p12 = scmp.lt.s32.totalorder %s1406_s17, %s1569_s0 }
  0x49   : > { %p1110_p9 = pnand %p1109_p7, %p1108_p3  ;;  %p1114_p0 = scmp.lt.s32.totalorder %s1112_s15, %s1107_s26 }
  0x4b   : > { %p1111_p13 = pneg %p1110_p9  ;;  %p1115_p5 = por %p1114_p0, %p1113_p12 }
  0x4d   : > { %p1116_p10 = pnand %p1115_p5, %p1111_p13 }
  0x4f   : > { %1119 = shalt.err (!%p1116_p10)
}
  0x50   : > { %s1120_s10 = scalar_lea.vmem %s1412_s22, 256  ;;  %s1246_s1 = smov [#allocation2]  }
  0x51   : > { %p1121_p1 = scmp.ne.s32.totalorder %s1412_s22, %s1120_s10  ;;  %s1125_s3 = sshll.u32 %s1246_s1, 4  ;;  %s1126_s3 = int_to_ptr.vmem [resolvable:$false] %s1125_s3 }
  0x52   : > { %s1127_s14 = scalar_lea.vmem %s1126_s3, 512  ;;  %p1128_p9 = scmp.lt.s32.totalorder %s1412_s22, %s1126_s3 }
  0x53   : > { %p1123_p2 = pnand %p1121_p1, %p1109_p7  ;;  %p1129_p6 = scmp.lt.s32.totalorder %s1127_s14, %s1120_s10 }
  0x55   : > { %p1124_p3 = pneg %p1123_p2  ;;  %p1130_p4 = por %p1129_p6, %p1128_p9 }
  0x57   : > { %p1131_p8 = pnand %p1130_p4, %p1124_p3 }
  0x59   : > { %1134 = shalt.err (!%p1131_p8)
}
  0x5a   : > { %s1595_s26 = smov 8   ;;  %s1596_s20 = smov 128  }
  0x5b   : > { %963 = dma.hbm_to_vmem [thread:$0]  (!%p1408_p11), %s1406_s17, 256, %s1412_s22, %s1414_s25, %s1596_s20, %s1596_s20, %s1595_s26  }
  0x5c   : > { %p1597_p7 = scmp.ne.s32.totalorder %s1588_s13, 0 }
  0x5d   : > { %s1441_s1 = sand.u32 (!%p1597_p7), 1, %s1229_s28   ;;  %p1598_p4 = scmp.ne.s32.totalorder (!%p1597_p7), %s1586_s11, 0 }
  0x5e   : > { %323 = sbr.rel (%p1597_p7) target bundleno = 761 (0x2f9), region = 48  ;;  %s1444_s3 = sshll.u32 (!%p1597_p7), %s1441_s1, 4 }
  0x5f   : > { %s326_s16 = scalar_lea.sflag (!%p1597_p7), [#allocation3], %s1441_s1  ;;  %s329_s15 = scalar_lea.vmem (!%p1597_p7), [#allocation2], %s1444_s3 }
  0x63   : > { %1204 = dma.done.wait (%p1598_p4), %s326_s16, 256  }
  0x64   : > { %1206 = vsyncadd (%p1598_p4), %s326_s16, 4294967040  ;;  %p1599_p8 = scmp.eq.s32.totalorder %s1318_s9, 0 }
  0x66   : > { %1208 = dma.done.wait (%p1599_p8), [#allocation6], 1536   ;;  %p1600_p6 = pmov %p1599_p8 }
  0x68   : > { %1210 = vsyncadd (%p1600_p6), [#allocation6], 4294965760  ;;  %p1601_p11 = pmov %p1600_p6 }
  0x69   : > { %p1602_p13 = pmov %p1600_p6 }
  0x6a   : > { %1212 = dma.done.wait (%p1601_p11), [#allocation9], 512  }
  0x6b   : > { %1214 = vsyncadd (%p1602_p13), [#allocation9], 4294966784  ;;  %v1247_v0 = vmov 0.0   ;;  %v391_v1 = vld [vmem:[#allocation5 + $0x38] sm:$0xff]  ;;  %v390_v2 = vld [vmem:[#allocation5 + $0x30] sm:$0xff]  ;;  %vm404_vm0 = vcmask 261120   ;;  %v394_v16 = vlaneseq }
  0x6c   : > { %475 = vmatprep.mubr.f32.mxu0 %v1247_v0  ;;  %v389_v3 = vld [vmem:[#allocation5 + $0x28] sm:$0xff]  ;;  %435 = vmatprep.subr.mxu0 %v391_v1  ;;  %v388_v4 = vld [vmem:[#allocation5 + $0x20] sm:$0xff]  ;;  %v387_v5 = vld [vmem:[#allocation5 + $0x18] sm:$0xff]  ;;  %s1466_s25 = scalar_lea.vmem [#allocation10], %s1444_s3  ;;  %s896_s21 = sshll.u32 %s1318_s9, 8 }
  0x6d   : > { %436 = vmatpush1.msra.mxu0 %v390_v2  ;;  %v386_v6 = vld [vmem:[#allocation5 + $0x10] sm:$0xff]  ;;  %v385_v7 = vld [vmem:[#allocation5 + $0x8] sm:$0xff]  ;;  %v384_v8 = vld [vmem:[#allocation5] sm:$0xff]  ;;  %v395_v17 = vshrl.u32 %v394_v16, 7  ;;  %s711_s18 = sshll.u32 %s1466_s25, 4  ;;  %s1486_s26 = scalar_lea.hbm %s1576_s7, %s896_s21  ;;  %s1478_s18 = int_to_ptr.vmem [resolvable:$true] %s711_s18 }
  0x6e   : > { %437 = vmatprep.subr.mxu0 %v389_v3  ;;  %v382_v9 = vld [vmem:[%s329_s15] sm:$0xff]  ;;  %v383_v10 = vld [vmem:[%s329_s15 + $0x8] sm:$0xff]  ;;  %s693_s20 = scalar_lea.sflag [#allocation4], %s1441_s1  ;;  %s1135_s16 = scalar_lea.vmem %s1478_s18, 256 }
  0x6f   : > { %438 = vmatpush1.msra.mxu0 %v388_v4  ;;  %v495_v11 = vld [vmem:[#allocation7 + $0x18] sm:$0xff]  ;;  %v494_v12 = vld [vmem:[#allocation7 + $0x10] sm:$0xff]  ;;  %v493_v13 = vld [vmem:[#allocation7 + $0x8] sm:$0xff]  ;;  %v396_v18 = vsub.s32 0, %v395_v17  ;;  %v400_v20 = vsub.s32 1, %v395_v17  ;;  %p1136_p12 = scmp.ne.s32.totalorder %s1478_s18, %s1135_s16  ;;  %p1603_p0 = scmp.ne.s32.totalorder %s1593_s24, 0 }
  0x70   : > { %439 = vmatprep.subr.mxu0 %v387_v5  ;;  %910 = vmatprep.subr.mxu1 %v495_v11  ;;  %v492_v14 = vld [vmem:[#allocation7] sm:$0xff]  ;;  %v589_v15 = vld [vmem:[#allocation8 + $0x18] sm:$0xff]  ;;  %v588_v33 = vld [vmem:[#allocation8 + $0x10] sm:$0xff]  ;;  %s1248_s15 = smov [#allocation10]  }
  0x71   : > { %440 = vmatpush1.msra.mxu0 %v386_v6  ;;  %911 = vmatpush3.msra.mxu1 %v495_v11  ;;  %v392_v19 = vld [vmem:[%s1571_s2] sm:$0x3]  ;;  %v587_v34 = vld [vmem:[#allocation8 + $0x8] sm:$0xff]  ;;  %p1137_p5 = pnand %p1136_p12, %p1603_p0  ;;  %s1139_s11 = sshll.u32 %s1248_s15, 4  ;;  %s1140_s11 = int_to_ptr.vmem [resolvable:$false] %s1139_s11 }
  0x72   : > { %441 = vmatprep.subr.mxu0 %v385_v7  ;;  %912 = vmatprep.subr.mxu1 %v494_v12  ;;  %v397_v21 = vrot.slane %v392_v19, %v396_v18  ;;  %v401_v22 = vrot.slane %v392_v19, %v400_v20  ;;  %v586_v35 = vld [vmem:[#allocation8] sm:$0xff]  ;;  %s1141_s13 = scalar_lea.vmem %s1140_s11, 512  ;;  %p1142_p1 = scmp.lt.s32.totalorder %s1478_s18, %s1140_s11 }
  0x73   : > { %442 = vmatpush1.msra.mxu0 %v384_v8  ;;  %913 = vmatpush3.msra.mxu1 %v494_v12  ;;  %v879_v36 = vld [vmem:[%s1573_s4] ss:$0 sm:$0xff]  ;;  %p1138_p10 = pneg %p1137_p5  ;;  %p1143_p2 = scmp.lt.s32.totalorder %s1141_s13, %s1135_s16 }
  0x74   : > { %877 = vmatmul.mubr.msk.f32.vlgmr.msra.gmra.mxu0 %vm404_vm0, %v382_v9  ;;  %914 = vmatprep.subr.mxu1 %v493_v13 }
  0x75   : > { %481 = vmatprep.mubr.f32.mxu0 %v1247_v0  ;;  %915 = vmatpush3.msra.mxu1 %v493_v13  ;;  %p1144_p3 = por %p1143_p2, %p1142_p1 }
  0x76   : > { %916 = vmatprep.subr.mxu1 %v492_v14  ;;  %921 = vmatprep.subr.mxu0 %v589_v15 }
  0x77   : > { %917 = vmatpush3.msra.mxu1 %v492_v14  ;;  %922 = vmatpush3.msra.mxu0 %v589_v15  ;;  %p1145_p9 = pnand %p1144_p3, %p1138_p10 }
  0x78   : > { %878 = vmatmul.mubr.msk.f32.gmra.mxu0 %vm404_vm0, %v383_v10  ;;  %923 = vmatprep.subr.mxu0 %v588_v33 }
  0x79   : > { %924 = vmatpush3.msra.mxu0 %v588_v33 }
  0x7a   : > { %925 = vmatprep.subr.mxu0 %v587_v34 }
  0x7b   : > { %926 = vmatpush3.msra.mxu0 %v587_v34 }
  0x7c   : > { %927 = vmatprep.subr.mxu0 %v586_v35 }
  0x7d   : > { %928 = vmatpush3.msra.mxu0 %v586_v35 }
 0x134   : > { %v477_v23 = vpop.f32.mrf.mxu0 }
 0x135   : > { %v478_v24 = vadd.f32 %v477_v23, %v397_v21 }
 0x136   : > { %v479_v25 = vpop.f32.mrf.mxu0 }
 0x137   : > { %488 = vst [vmem:[%s1466_s25] sm:$0xff] %v478_v24  ;;  %v480_v26 = vadd.f32 %v479_v25, %v401_v22 }
 0x138   : > { %v483_v27 = vpop.f32.mrf.mxu0 }
 0x139   : > { %v490_v28 = vmax.f32 %v480_v26, 0.0  ;;  %v484_v29 = vadd.f32 %v483_v27, %v397_v21 }
 0x13a   : > { %v485_v30 = vpop.f32.mrf.mxu0 }
 0x13b   : > { %489 = vst [vmem:[%s1466_s25 + $0x8] sm:$0xff] %v484_v29  ;;  %v486_v31 = vadd.f32 %v485_v30, %v401_v22  ;;  %918 = vmatprep.mubr.msk.f32.mxu1 %vm404_vm0, %v490_v28 }
 0x13d   : > { %v491_v32 = vmax.f32 %v486_v31, 0.0 }
 0x13f   : > { %919 = vmatmul.mubr.msk.f32.vlgmr.msra.gmra.mxu1 %vm404_vm0, %v491_v32 }
 0x1ff   : > { %v920_v37 = vpop.f32.mrf.mxu1 }
 0x200   : > { %v581_v38 = vadd.f32 %v920_v37, %v879_v36 }
 0x201   : > { %v575_v39 = vpop.f32.mrf.mxu1 }
 0x202   : > { %v576_v40 = vadd.f32 %v879_v36, %v575_v39  ;;  %v585_v42 = vmax.f32 %v581_v38, 0.0 }
 0x204   : > { %v584_v41 = vmax.f32 %v576_v40, 0.0 }
 0x206   : > { %929 = vmatprep.mubr.msk.f32.mxu0 %vm404_vm0, %v584_v41 }
 0x207   : > { %930 = vmatmul.mubr.msk.f32.vlgmr.msra.gmra.mxu0 %vm404_vm0, %v585_v42 }
 0x208   : > { %1148 = shalt.err (!%p1145_p9)
}
 0x209   : > { %s1149_s25 = scalar_lea.hbm %s1486_s26, 256  ;;  %s1153_s10 = scalar_lea.hbm %s1576_s7, 512 }
 0x20a   : > { %p1150_p7 = scmp.ne.s32.totalorder %s1486_s26, %s1149_s25  ;;  %p1154_p6 = scmp.lt.s32.totalorder %s1486_s26, %s1576_s7 }
 0x20b   : > { %p1155_p11 = scmp.lt.s32.totalorder %s1153_s10, %s1149_s25 }
 0x20c   : > { %p1151_p4 = pnand %p1150_p7, %p1603_p0 }
 0x20d   : > { %p1156_p13 = por %p1155_p11, %p1154_p6 }
 0x20e   : > { %p1152_p8 = pneg %p1151_p4 }
 0x210   : > { %p1157_p12 = pnand %p1156_p13, %p1152_p8 }
 0x212   : > { %1160 = shalt.err (!%p1157_p12)
}
 0x213   : > { %s1249_s16 = smov 128   ;;  %s1250_s11 = smov 8   ;;  %v882_v43 = vld [vmem:[%s1575_s6] ss:$0 sm:$0xff] }
 0x214   : > { %946 = dma.vmem_to_hbm [thread:$0]  (%p1603_p0), %s1478_s18, 256, %s1486_s26, %s693_s20, %s1249_s16, %s1249_s16, %s1250_s11  }
 0x215   : > { %s378_s18 = scalar_lea.vmem [#allocation11], %s1444_s3  ;;  %s1523_s22 = scalar_lea.hbm %s1577_s8, %s896_s21 }
 0x216   : > { %s727_s26 = sshll.u32 %s378_s18, 4  ;;  %s698_s10 = scalar_lea.sflag [#allocation12], %s1441_s1  ;;  %s1525_s26 = int_to_ptr.vmem [resolvable:$true] %s727_s26 }
 0x217   : > { %s1161_s14 = scalar_lea.vmem %s1525_s26, 256  ;;  %s1251_s3 = smov [#allocation11]  }
 0x218   : > { %p1162_p5 = scmp.ne.s32.totalorder %s1525_s26, %s1161_s14  ;;  %s1165_s9 = sshll.u32 %s1251_s3, 4  ;;  %s1166_s9 = int_to_ptr.vmem [resolvable:$false] %s1165_s9 }
 0x219   : > { %s1167_s15 = scalar_lea.vmem %s1166_s9, 512  ;;  %p1168_p2 = scmp.lt.s32.totalorder %s1525_s26, %s1166_s9 }
 0x21a   : > { %p1163_p10 = pnand %p1162_p5, %p1603_p0  ;;  %p1169_p3 = scmp.lt.s32.totalorder %s1167_s15, %s1161_s14 }
 0x21c   : > { %p1164_p1 = pneg %p1163_p10  ;;  %p1170_p9 = por %p1169_p3, %p1168_p2 }
 0x21e   : > { %p1171_p7 = pnand %p1170_p9, %p1164_p1 }
 0x2c7   : > { %v931_v44 = vpop.f32.mrf.mxu0 }
 0x2c8   : > { %v675_v45 = vadd.f32 %v931_v44, %v882_v43 }
 0x2c9   : > { %v669_v46 = vpop.f32.mrf.mxu0 }
 0x2ca   : > { %v886_v47 = vmul.f32 -1.442695, %v675_v45  ;;  %v670_v48 = vadd.f32 %v882_v43, %v669_v46 }
 0x2cc   : > { %1021 = vpow2.f32 %v886_v47  ;;  %v885_v49 = vmul.f32 -1.442695, %v670_v48 }
 0x2ce   : > { %1023 = vpow2.f32 %v885_v49 }
 0x2d9   : > { %v1022_v50 = vpop.eup %1021 }
 0x2da   : > { %v685_v51 = vadd.f32 1.0, %v1022_v50 }
 0x2db   : > { %v1024_v52 = vpop.eup %1023 }
 0x2dc   : > { %1025 = vrcp.f32 %v685_v51  ;;  %v684_v53 = vadd.f32 1.0, %v1024_v52 }
 0x2de   : > { %1027 = vrcp.f32 %v684_v53 }
 0x2e9   : > { %v1026_v54 = vpop.eup %1025 }
 0x2ea   : > { %691 = vst [vmem:[%s378_s18 + $0x8] sm:$0xff] %v1026_v54 }
 0x2eb   : > { %v1028_v55 = vpop.eup %1027 }
 0x2ec   : > { %690 = vst [vmem:[%s378_s18] sm:$0xff] %v1028_v55 }
 0x2ed   : > { %1174 = shalt.err (!%p1171_p7)
}
 0x2ee   : > { %s1175_s21 = scalar_lea.hbm %s1523_s22, 256  ;;  %s1179_s17 = scalar_lea.hbm %s1577_s8, 512 }
 0x2ef   : > { %p1176_p4 = scmp.ne.s32.totalorder %s1523_s22, %s1175_s21  ;;  %p1180_p11 = scmp.lt.s32.totalorder %s1523_s22, %s1577_s8 }
 0x2f0   : > { %p1181_p13 = scmp.lt.s32.totalorder %s1179_s17, %s1175_s21 }
 0x2f1   : > { %p1177_p8 = pnand %p1176_p4, %p1603_p0 }
 0x2f2   : > { %p1182_p12 = por %p1181_p13, %p1180_p11 }
 0x2f3   : > { %p1178_p6 = pneg %p1177_p8 }
 0x2f5   : > { %p1183_p5 = pnand %p1182_p12, %p1178_p6 }
 0x2f7   : > { %1186 = shalt.err (!%p1183_p5)
}
 0x2f8   : > { %947 = dma.vmem_to_hbm [thread:$0]  (%p1603_p0), %s1525_s26, 256, %s1523_s22, %s698_s10, %s1249_s16, %s1249_s16, %s1250_s11  }
 0x2f9 PF: > { %s742_s25 = sand.u32 1, %s1225_s27   ;;  %p1604_p10 = scmp.ne.s32.totalorder %s1587_s12, 0 }
 0x2fa   : > { %p1605_p1 = scmp.ge.s32.totalorder %s1237_s30, 2  ;;  %s743_s14 = scalar_lea.sflag [#allocation4], %s742_s25 }
 0x2fc   : > { %p965_p2 = pnand %p1605_p1, %p1604_p10 }
 0x2fe   : > { %p966_p3 = pneg %p965_p2 }
 0x300   : > { %1216 = dma.done.wait (%p966_p3), %s743_s14, 256  }
 0x301   : > { %1218 = vsyncadd (%p966_p3), %s743_s14, 4294967040  ;;  %s752_s3 = scalar_lea.sflag [#allocation12], %s742_s25 }
 0x302   : > { %1220 = dma.done.wait (%p966_p3), %s752_s3, 256  }
 0x303   : > { %1222 = vsyncadd (%p966_p3), %s752_s3, 4294967040  ;;  %p27_p0 = scmp.ge.s32.totalorder %s1372_s19, 4   ;;  %s1606_s27 = smov %s1229_s28 }
 0x304   : > { %s1607_s28 = smov %s1233_s29  ;;  %s1608_s29 = smov %s1393_s23 }
 0x305   : > { %s1609_s30 = smov %s1372_s19  ;;  %29 = sbr.rel (!%p27_p0) target bundleno = 12 (0xc), region = 122 }
 0x30a   :  { %757 = vsyncpa [#allocation3], 1 }
 0x30b   :  { %759 = vsyncpa [#allocation3 + $0x1], 1 }
 0x30c   :  { %760 = vsyncpa [#allocation6], 1 }
 0x30d   :  { %761 = vsyncpa [#allocation9], 1 }
 0x30e   :  { %762 = vsyncpa [#allocation4], 1 }
 0x30f   :  { %764 = vsyncpa [#allocation4 + $0x1], 1 }
 0x310   :  { %765 = vsyncpa [#allocation12], 1 }
 0x311   :  { %767 = vsyncpa [#allocation12 + $0x1], 1 }

</bundles_post_ra>
